<compile_context>
chip_gen: v7x
topology: tpu7x:2x2x1
jax: 0.10.0
libtpu: 0.0.40
codegen_flags: <defaults>
</compile_context>

<pallas_src>
import functools

import jax
import jax.numpy as jnp
from jax.experimental import pallas as pl
from jax.experimental.pallas import tpu as pltpu

_VMEM_LIMIT = 48 * 1024 * 1024  # <= v7x 64 MiB physical; fine on v5e/v6e


# ----------------------------------------------------------------------------
# Tiling helper
# ----------------------------------------------------------------------------
def _pick_tile(dim, target, align):
    """Largest tile <= target that divides dim (aligned), else full dim."""
    if dim <= target:
        return dim
    t = (target // align) * align
    while t >= align:
        if dim % t == 0:
            return t
        t -= align
    return dim


# ----------------------------------------------------------------------------
# Pallas kernels
# ----------------------------------------------------------------------------
def _dense_kernel(x_ref, w_ref, b_ref, o_ref, *, activation):
    """y = act(x @ W + b); resident [K, N] weight, grid only over M tiles."""
    y = jnp.dot(x_ref[...], w_ref[...], preferred_element_type=jnp.float32)
    y = y + b_ref[...].astype(jnp.float32)
    if activation == "gelu":
        # TODO(synk): HF BERT uses exact erf GELU; tanh approximation used
        # here for robust TPU lowering inside the kernel.
        y = jax.nn.gelu(y, approximate=True)
    o_ref[...] = y.astype(o_ref.dtype)


def _dense_ln_kernel(x_ref, w_ref, b_ref, res_ref, g_ref, bt_ref, o_ref, *,
                     eps):
    """y = LayerNorm(x @ W + b + residual) * gamma + beta (fused epilogue).

    Resident [K, N] weight => single matmul step per M tile; the LN reduction
    over the hidden dim runs immediately in the epilogue.
    """
    y = jnp.dot(x_ref[...], w_ref[...], preferred_element_type=jnp.float32)
    y = (y + b_ref[...].astype(jnp.float32)
         + res_ref[...].astype(jnp.float32))
    mu = jnp.mean(y, axis=-1, keepdims=True)
    var = jnp.mean((y - mu) ** 2, axis=-1, keepdims=True)
    yn = (y - mu) * jax.lax.rsqrt(var + eps)
    o_ref[...] = (yn * g_ref[...] + bt_ref[...]).astype(o_ref.dtype)


def _ln_kernel(x_ref, g_ref, b_ref, o_ref, *, eps):
    """Row-tiled y = LayerNorm(x) * gamma + beta (no residual)."""
    x = x_ref[...].astype(jnp.float32)
    mu = jnp.mean(x, axis=-1, keepdims=True)
    var = jnp.mean((x - mu) ** 2, axis=-1, keepdims=True)
    xn = (x - mu) * jax.lax.rsqrt(var + eps)
    o_ref[...] = (xn * g_ref[...] + b_ref[...]).astype(o_ref.dtype)


def _attn_kernel(qkv_ref, m_ref, o_ref, *, n_heads, d_head, hidden, scale,
                 group_size):
    """One batch: multi-head softmax(Q K^T * scale + mask) V.

    qkv block is the fused [1, S, 3H] projection (no wrapper-side lane slices),
    Q is pre-scaled once, heads are processed in lane-aligned groups and each
    group's context is stored directly into a static lane slice of o_ref —
    no full-width concat keeping all heads live.
    """
    # TODO(synk): for long sequences (>~1-2k) convert to a blocked
    # online-softmax (flash) form with a KV grid axis instead of full [S, S].
    qkv = qkv_ref[0]                                 # [S, 3H] bf16
    mask = m_ref[0].astype(jnp.float32)              # [1, S] additive mask

    q_all = qkv[:, :hidden] * scale                  # pre-scale Q once (bf16)
    k_all = qkv[:, hidden:2 * hidden]
    v_all = qkv[:, 2 * hidden:]

    n_groups = n_heads // group_size
    gw = group_size * d_head
    for g in range(n_groups):
        ctxs = []
        for hh in range(group_size):
            h = g * group_size + hh
            sl = slice(h * d_head, (h + 1) * d_head)
            q_h, k_h, v_h = q_all[:, sl], k_all[:, sl], v_all[:, sl]
            # Contract last axes directly: no explicit K transpose.
            s = jax.lax.dot_general(q_h, k_h, (((1,), (1,)), ((), ())),
                                    preferred_element_type=jnp.float32)
            s = s + mask                             # [S, S], f32
            s = s - jnp.max(s, axis=-1, keepdims=True)
            p = jnp.exp(s)
            denom = jnp.sum(p, axis=-1, keepdims=True)
            p = p * pl.reciprocal(denom, approx=True)   # EUP, off the VPU path
            ctx = jnp.dot(p.astype(v_h.dtype), v_h,
                          preferred_element_type=jnp.float32)   # [S, Dh]
            ctxs.append(ctx)
        group_ctx = ctxs[0] if group_size == 1 else jnp.concatenate(ctxs, -1)
        o_ref[:, :, g * gw:(g + 1) * gw] = (
            group_ctx[None].astype(o_ref.dtype))     # static lane-slice store


# ----------------------------------------------------------------------------
# Pallas wrappers
# ----------------------------------------------------------------------------
def dense(x, w, b, activation=None, tm=512):
    """y = act(x @ w + b); resident weight in VMEM, grid only over M."""
    M, K = x.shape
    N = w.shape[1]
    TM = _pick_tile(M, tm, 16)          # 16-aligned rows for bf16 packing
    kernel = functools.partial(_dense_kernel, activation=activation)
    # TODO(synk): when pl.Buffered(1) is universally supported for constant
    # index_map blocks, single-buffer the resident weight to free ~|W| VMEM.
    return pl.pallas_call(
        kernel,
        out_shape=jax.ShapeDtypeStruct((M, N), jnp.bfloat16),
        grid=(M // TM,),
        in_specs=[
            pl.BlockSpec((TM, K), lambda i: (i, 0)),
            pl.BlockSpec((K, N), lambda i: (0, 0)),    # resident weight
            pl.BlockSpec((1, N), lambda i: (0, 0)),
        ],
        out_specs=pl.BlockSpec((TM, N), lambda i: (i, 0)),
        compiler_params=pltpu.CompilerParams(
            dimension_semantics=("parallel",),
            vmem_limit_bytes=_VMEM_LIMIT),
    )(x, w, b)


def dense_ln(x, w, b, residual, gamma, beta, eps=1e-12, tm=512):
    """y = LayerNorm(x @ w + b + residual) * gamma + beta, fused epilogue."""
    M, K = x.shape
    N = w.shape[1]
    TM = _pick_tile(M, tm, 16)
    kernel = functools.partial(_dense_ln_kernel, eps=eps)
    return pl.pallas_call(
        kernel,
        out_shape=jax.ShapeDtypeStruct((M, N), jnp.bfloat16),
        grid=(M // TM,),
        in_specs=[
            pl.BlockSpec((TM, K), lambda i: (i, 0)),
            pl.BlockSpec((K, N), lambda i: (0, 0)),    # resident weight
            pl.BlockSpec((1, N), lambda i: (0, 0)),
            pl.BlockSpec((TM, N), lambda i: (i, 0)),
            pl.BlockSpec((1, N), lambda i: (0, 0)),
            pl.BlockSpec((1, N), lambda i: (0, 0)),
        ],
        out_specs=pl.BlockSpec((TM, N), lambda i: (i, 0)),
        compiler_params=pltpu.CompilerParams(
            dimension_semantics=("parallel",),
            vmem_limit_bytes=_VMEM_LIMIT),
    )(x, w, b, residual, gamma, beta)


def layernorm(x, gamma, beta, eps=1e-12, tm=512):
    """Row-tiled LayerNorm (no residual) — used for the embedding LN."""
    M, H = x.shape
    TM = _pick_tile(M, tm, 16)
    kernel = functools.partial(_ln_kernel, eps=eps)
    return pl.pallas_call(
        kernel,
        out_shape=jax.ShapeDtypeStruct((M, H), jnp.bfloat16),
        grid=(M // TM,),
        in_specs=[
            pl.BlockSpec((TM, H), lambda i: (i, 0)),
            pl.BlockSpec((1, H), lambda i: (0, 0)),
            pl.BlockSpec((1, H), lambda i: (0, 0)),
        ],
        out_specs=pl.BlockSpec((TM, H), lambda i: (i, 0)),
        compiler_params=pltpu.CompilerParams(
            dimension_semantics=("parallel",),
            vmem_limit_bytes=_VMEM_LIMIT),
    )(x, gamma, beta)


def attention(qkv, add_mask, n_heads, hidden):
    """qkv: [B, S, 3H] bf16 fused projection; add_mask: [B, 1, S] f32."""
    B, S, _ = qkv.shape
    d_head = hidden // n_heads
    scale = 1.0 / (d_head ** 0.5)

    # Group heads so each context store is 128 lanes wide when possible
    # (d_head=64 -> head pairs); otherwise fall back to one full-width write.
    group_size = max(1, min(n_heads, 128 // max(d_head, 1)))
    while n_heads % group_size:
        group_size -= 1
    if (group_size * d_head) % 128 != 0 and group_size * d_head != hidden:
        group_size = n_heads

    kernel = functools.partial(_attn_kernel, n_heads=n_heads, d_head=d_head,
                               hidden=hidden, scale=scale,
                               group_size=group_size)
    # TODO(synk): for v7x megacore with small B, add a head-group grid axis
    # (valid when group width is 128-aligned) so both TensorCores stay busy.
    return pl.pallas_call(
        kernel,
        out_shape=jax.ShapeDtypeStruct((B, S, hidden), jnp.bfloat16),
        grid=(B,),
        in_specs=[
            pl.BlockSpec((1, S, 3 * hidden), lambda b: (b, 0, 0)),
            pl.BlockSpec((1, 1, S), lambda b: (b, 0, 0)),
        ],
        out_specs=pl.BlockSpec((1, S, hidden), lambda b: (b, 0, 0)),
        compiler_params=pltpu.CompilerParams(
            dimension_semantics=("parallel",),
            vmem_limit_bytes=_VMEM_LIMIT),
    )(qkv, add_mask)


# ----------------------------------------------------------------------------
# Parameter init (deterministic, scratch config — mimics from_config)
# ----------------------------------------------------------------------------
def init_params(key, cfg):
    H, F, L = cfg["hidden"], cfg["ffn"], cfg["layers"]
    V, P = cfg["vocab"], cfg["max_pos"]
    keys = iter(jax.random.split(key, 8 + 8 * L))

    def w(shape, dtype=jnp.bfloat16, scale=0.02):
        return (scale * jax.random.normal(next(keys), shape,
                                          jnp.float32)).astype(dtype)

    # QA head: real shape (H, 2), padded to (H, 128) for a lane-dense out_spec.
    qa_w = jnp.zeros((H, 128), jnp.bfloat16).at[:, :2].set(w((H, 2)))

    params = dict(
        word_emb=w((V, H), jnp.float32),
        pos_emb=w((P, H), jnp.float32),
        type_emb=w((2, H), jnp.float32),
        emb_ln_g=jnp.ones((1, H), jnp.float32),
        emb_ln_b=jnp.zeros((1, H), jnp.float32),
        qa_w=qa_w,
        qa_b=jnp.zeros((1, 128), jnp.float32),
        layers=[],
    )
    for _ in range(L):
        params["layers"].append(dict(
            # Fused QKV projection: one [H, 3H] matmul per layer.
            wqkv=w((H, 3 * H)), bqkv=jnp.zeros((1, 3 * H), jnp.float32),
            wo=w((H, H)), bo=jnp.zeros((1, H), jnp.float32),
            ln1_g=jnp.ones((1, H), jnp.float32),
            ln1_b=jnp.zeros((1, H), jnp.float32),
            w1=w((H, F)), b1=jnp.zeros((1, F), jnp.float32),
            w2=w((F, H)), b2=jnp.zeros((1, H), jnp.float32),
            ln2_g=jnp.ones((1, H), jnp.float32),
            ln2_b=jnp.zeros((1, H), jnp.float32),
        ))
    return params


# ----------------------------------------------------------------------------
# Forward pass (glue in plain JAX, hot paths in Pallas kernels)
# ----------------------------------------------------------------------------
def qa_forward(params, input_ids, attention_mask, token_type_ids, cfg):
    B, S = input_ids.shape
    H, nH = cfg["hidden"], cfg["heads"]

    # Embeddings (gather is glue), cast to bf16 (halves LN kernel read
    # traffic; LN statistics are still computed in f32 inside the kernel).
    pos_ids = jnp.arange(S)
    emb = (params["word_emb"][input_ids]
           + params["pos_emb"][pos_ids][None, :, :]
           + params["type_emb"][token_type_ids])              # [B, S, H] f32
    x = layernorm(emb.reshape(B * S, H).astype(jnp.bfloat16),
                  params["emb_ln_g"], params["emb_ln_b"])     # [B*S, H] bf16

    # Additive attention mask kept in f32: (1 - mask) * -1e9, shape [B, 1, S]
    ext_mask = ((1.0 - attention_mask.astype(jnp.float32)) * -1e9
                ).reshape(B, 1, S)

    for lp in params["layers"]:
        # --- self-attention block (fused QKV; fused out-proj + res + LN1) ---
        qkv = dense(x, lp["wqkv"], lp["bqkv"])                # [B*S, 3H] bf16
        qkv = qkv.reshape(B, S, 3 * H)                        # free reshape
        ctx = attention(qkv, ext_mask, nH, H).reshape(B * S, H)
        x = dense_ln(ctx, lp["wo"], lp["bo"], x, lp["ln1_g"], lp["ln1_b"])
        # --- feed-forward block (fused W2 + residual + LN2) ---
        h = dense(x, lp["w1"], lp["b1"], activation="gelu")
        x = dense_ln(h, lp["w2"], lp["b2"], x, lp["ln2_g"], lp["ln2_b"])

    # QA head: lane-dense padded Linear(H, 128); only first 2 cols are real.
    logits = dense(x, params["qa_w"], params["qa_b"]).astype(jnp.float32)
    logits = logits[:, :2].reshape(B, S, 2)
    start_logits = logits[..., 0]   # [B, S]
    end_logits = logits[..., 1]     # [B, S]
    return start_logits, end_logits


# ----------------------------------------------------------------------------
if __name__ == "__main__":
    cfg = dict(vocab=128, hidden=32, heads=2, ffn=64, layers=2, max_pos=32)
    B, S = 2, 8

    key = jax.random.PRNGKey(0)
    k_param, k_ids = jax.random.split(key)
    params = init_params(k_param, cfg)

    input_ids = jax.random.randint(k_ids, (B, S), 0, cfg["vocab"],
                                   dtype=jnp.int32)
    attention_mask = jnp.ones((B, S), jnp.float32)
    token_type_ids = jnp.zeros((B, S), jnp.int32)

    fwd = jax.jit(lambda p, i, m, t: qa_forward(p, i, m, t, cfg))
    start_logits, end_logits = fwd(params, input_ids, attention_mask,
                                   token_type_ids)
    jax.block_until_ready((start_logits, end_logits))

    assert start_logits.shape == (B, S) and end_logits.shape == (B, S)
    assert bool(jnp.isfinite(start_logits).all())
    assert bool(jnp.isfinite(end_logits).all())
    print("KERNEL_OK")
</pallas_src>

<mosaic_0001>
module attributes {stable_mosaic.version = 11 : i64} {
  func.func @_attn_kernel(%arg0: i32, %arg1: memref<1x8x96xbf16, #tpu.memory_space<vmem>>, %arg2: memref<1x1x8xf32, #tpu.memory_space<vmem>>, %arg3: memref<1x8x32xbf16, #tpu.memory_space<vmem>>) attributes {dimension_semantics = [#tpu.dimension_semantics<parallel>], iteration_bounds = array<i64: 2>, scalar_prefetch = 0 : i64, scratch_operands = 0 : i64, tpu.core_type = #tpu.core_type<tc>, window_params = [{transform_indices = @transform_0, window_bounds = array<i64: 1, 8, 96>}, {transform_indices = @transform_1, window_bounds = array<i64: 1, 1, 8>}, {transform_indices = @transform_2, window_bounds = array<i64: 1, 8, 32>}]} {
    %c0 = arith.constant 0 : index
    %c0_0 = arith.constant 0 : index
    %c0_1 = arith.constant 0 : index
    %0 = vector.load %arg1[%c0, %c0_0, %c0_1] : memref<1x8x96xbf16, #tpu.memory_space<vmem>>, vector<1x8x96xbf16>
    %1 = vector.shape_cast %0 : vector<1x8x96xbf16> to vector<8x96xbf16>
    %c0_2 = arith.constant 0 : index
    %c0_3 = arith.constant 0 : index
    %c0_4 = arith.constant 0 : index
    %2 = vector.load %arg2[%c0_2, %c0_3, %c0_4] : memref<1x1x8xf32, #tpu.memory_space<vmem>>, vector<1x1x8xf32>
    %3 = vector.shape_cast %2 : vector<1x1x8xf32> to vector<1x8xf32>
    %4 = vector.extract_strided_slice %1 {offsets = [0, 0], sizes = [8, 32], strides = [1, 1]} : vector<8x96xbf16> to vector<8x32xbf16>
    %cst = arith.constant 2.500000e-01 : bf16
    %5 = vector.broadcast %cst : bf16 to vector<8x32xbf16>
    %6 = arith.mulf %4, %5 : vector<8x32xbf16>
    %7 = vector.extract_strided_slice %1 {offsets = [0, 32], sizes = [8, 32], strides = [1, 1]} : vector<8x96xbf16> to vector<8x32xbf16>
    %8 = vector.extract_strided_slice %1 {offsets = [0, 64], sizes = [8, 32], strides = [1, 1]} : vector<8x96xbf16> to vector<8x32xbf16>
    %9 = vector.extract_strided_slice %6 {offsets = [0, 0], sizes = [8, 16], strides = [1, 1]} : vector<8x32xbf16> to vector<8x16xbf16>
    %10 = vector.extract_strided_slice %7 {offsets = [0, 0], sizes = [8, 16], strides = [1, 1]} : vector<8x32xbf16> to vector<8x16xbf16>
    %11 = vector.extract_strided_slice %8 {offsets = [0, 0], sizes = [8, 16], strides = [1, 1]} : vector<8x32xbf16> to vector<8x16xbf16>
    %cst_5 = arith.constant dense<0.000000e+00> : vector<8x8xf32>
    %12 = tpu.matmul %9, %10, %cst_5 {dimension_numbers = #tpu.dot_dimension_numbers<[1], [1], [0], [0], [0, 0, 1, 0], [], []>} : vector<8x16xbf16>, vector<8x16xbf16>, vector<8x8xf32> -> vector<8x8xf32>
    %13 = vector.broadcast %3 : vector<1x8xf32> to vector<8x8xf32>
    %14 = arith.addf %12, %13 : vector<8x8xf32>
    %cst_6 = arith.constant dense<0xFF800000> : vector<8xf32>
    %15 = vector.multi_reduction <maximumf>, %14, %cst_6 [1] : vector<8x8xf32> to vector<8xf32>
    %16 = vector.shape_cast %15 : vector<8xf32> to vector<8x1xf32>
    %17 = vector.broadcast %16 : vector<8x1xf32> to vector<8x8xf32>
    %18 = arith.subf %14, %17 : vector<8x8xf32>
    %19 = math.exp %18 : vector<8x8xf32>
    %cst_7 = arith.constant dense<0.000000e+00> : vector<8xf32>
    %20 = vector.multi_reduction <add>, %19, %cst_7 [1] : vector<8x8xf32> to vector<8xf32>
    %21 = vector.shape_cast %20 : vector<8xf32> to vector<8x1xf32>
    %22 = tpu.reciprocal %21 {approx = true} : vector<8x1xf32> -> vector<8x1xf32>
    %23 = vector.broadcast %22 : vector<8x1xf32> to vector<8x8xf32>
    %24 = arith.mulf %19, %23 : vector<8x8xf32>
    %25 = arith.truncf %24 : vector<8x8xf32> to vector<8x8xbf16>
    %cst_8 = arith.constant dense<0.000000e+00> : vector<8x16xf32>
    %26 = tpu.matmul %25, %11, %cst_8 {dimension_numbers = #tpu.dot_dimension_numbers<[1], [0], [0], [1], [0, 0, 1, 1], [], []>} : vector<8x8xbf16>, vector<8x16xbf16>, vector<8x16xf32> -> vector<8x16xf32>
    %27 = vector.extract_strided_slice %6 {offsets = [0, 16], sizes = [8, 16], strides = [1, 1]} : vector<8x32xbf16> to vector<8x16xbf16>
    %28 = vector.extract_strided_slice %7 {offsets = [0, 16], sizes = [8, 16], strides = [1, 1]} : vector<8x32xbf16> to vector<8x16xbf16>
    %29 = vector.extract_strided_slice %8 {offsets = [0, 16], sizes = [8, 16], strides = [1, 1]} : vector<8x32xbf16> to vector<8x16xbf16>
    %cst_9 = arith.constant dense<0.000000e+00> : vector<8x8xf32>
    %30 = tpu.matmul %27, %28, %cst_9 {dimension_numbers = #tpu.dot_dimension_numbers<[1], [1], [0], [0], [0, 0, 1, 0], [], []>} : vector<8x16xbf16>, vector<8x16xbf16>, vector<8x8xf32> -> vector<8x8xf32>
    %31 = vector.broadcast %3 : vector<1x8xf32> to vector<8x8xf32>
    %32 = arith.addf %30, %31 : vector<8x8xf32>
    %cst_10 = arith.constant dense<0xFF800000> : vector<8xf32>
    %33 = vector.multi_reduction <maximumf>, %32, %cst_10 [1] : vector<8x8xf32> to vector<8xf32>
    %34 = vector.shape_cast %33 : vector<8xf32> to vector<8x1xf32>
    %35 = vector.broadcast %34 : vector<8x1xf32> to vector<8x8xf32>
    %36 = arith.subf %32, %35 : vector<8x8xf32>
    %37 = math.exp %36 : vector<8x8xf32>
    %cst_11 = arith.constant dense<0.000000e+00> : vector<8xf32>
    %38 = vector.multi_reduction <add>, %37, %cst_11 [1] : vector<8x8xf32> to vector<8xf32>
    %39 = vector.shape_cast %38 : vector<8xf32> to vector<8x1xf32>
    %40 = tpu.reciprocal %39 {approx = true} : vector<8x1xf32> -> vector<8x1xf32>
    %41 = vector.broadcast %40 : vector<8x1xf32> to vector<8x8xf32>
    %42 = arith.mulf %37, %41 : vector<8x8xf32>
    %43 = arith.truncf %42 : vector<8x8xf32> to vector<8x8xbf16>
    %cst_12 = arith.constant dense<0.000000e+00> : vector<8x16xf32>
    %44 = tpu.matmul %43, %29, %cst_12 {dimension_numbers = #tpu.dot_dimension_numbers<[1], [0], [0], [1], [0, 0, 1, 1], [], []>} : vector<8x8xbf16>, vector<8x16xbf16>, vector<8x16xf32> -> vector<8x16xf32>
    %45 = tpu.concatenate %26, %44 in 1 : vector<8x16xf32>, vector<8x16xf32> -> vector<8x32xf32>
    %46 = vector.shape_cast %45 : vector<8x32xf32> to vector<1x8x32xf32>
    %47 = arith.truncf %46 : vector<1x8x32xf32> to vector<1x8x32xbf16>
    %c0_13 = arith.constant 0 : index
    %c0_14 = arith.constant 0 : index
    %c0_15 = arith.constant 0 : index
    %48 = vector.load %arg3[%c0_13, %c0_14, %c0_15] : memref<1x8x32xbf16, #tpu.memory_space<vmem>>, vector<1x8x32xbf16>
    tpu.vector_store %arg3[%c0_13, %c0_14, %c0_15], %47 {strides = array<i32>} : memref<1x8x32xbf16, #tpu.memory_space<vmem>>, vector<1x8x32xbf16>,
    return
  }
  func.func @transform_0(%arg0: i32) -> (i32, i32, i32) {
    %c0_i32 = arith.constant 0 : i32
    %c0_i32_0 = arith.constant 0 : i32
    %c0_i32_1 = arith.constant 0 : i32
    return %arg0, %c0_i32, %c0_i32_0 : i32, i32, i32
  }
  func.func @transform_1(%arg0: i32) -> (i32, i32, i32) {
    %c0_i32 = arith.constant 0 : i32
    %c0_i32_0 = arith.constant 0 : i32
    %c0_i32_1 = arith.constant 0 : i32
    return %arg0, %c0_i32, %c0_i32_0 : i32, i32, i32
  }
  func.func @transform_2(%arg0: i32) -> (i32, i32, i32) {
    %c0_i32 = arith.constant 0 : i32
    %c0_i32_0 = arith.constant 0 : i32
    %c0_i32_1 = arith.constant 0 : i32
    return %arg0, %c0_i32, %c0_i32_0 : i32, i32, i32
  }
}

module attributes {stable_mosaic.version = 11 : i64} {
  func.func @_ln_kernel(%arg0: i32, %arg1: memref<16x32xbf16, #tpu.memory_space<vmem>>, %arg2: memref<1x32xf32, #tpu.memory_space<vmem>>, %arg3: memref<1x32xf32, #tpu.memory_space<vmem>>, %arg4: memref<16x32xbf16, #tpu.memory_space<vmem>>) attributes {dimension_semantics = [#tpu.dimension_semantics<parallel>], iteration_bounds = array<i64: 1>, scalar_prefetch = 0 : i64, scratch_operands = 0 : i64, tpu.core_type = #tpu.core_type<tc>, window_params = [{transform_indices = @transform_0, window_bounds = array<i64: 16, 32>}, {pipeline_mode = #tpu.pipeline_mode<synchronous>, transform_indices = @transform_1, window_bounds = array<i64: 1, 32>}, {pipeline_mode = #tpu.pipeline_mode<synchronous>, transform_indices = @transform_2, window_bounds = array<i64: 1, 32>}, {transform_indices = @transform_3, window_bounds = array<i64: 16, 32>}]} {
    %c0 = arith.constant 0 : index
    %c0_0 = arith.constant 0 : index
    %0 = vector.load %arg1[%c0, %c0_0] : memref<16x32xbf16, #tpu.memory_space<vmem>>, vector<16x32xbf16>
    %1 = arith.extf %0 : vector<16x32xbf16> to vector<16x32xf32>
    %cst = arith.constant dense<0.000000e+00> : vector<16xf32>
    %2 = vector.multi_reduction <add>, %1, %cst [1] : vector<16x32xf32> to vector<16xf32>
    %3 = vector.shape_cast %2 : vector<16xf32> to vector<16x1xf32>
    %cst_1 = arith.constant 3.200000e+01 : f32
    %4 = vector.broadcast %cst_1 : f32 to vector<16x1xf32>
    %5 = arith.divf %3, %4 : vector<16x1xf32>
    %6 = vector.broadcast %5 : vector<16x1xf32> to vector<16x32xf32>
    %7 = arith.subf %1, %6 : vector<16x32xf32>
    %8 = arith.mulf %7, %7 : vector<16x32xf32>
    %cst_2 = arith.constant dense<0.000000e+00> : vector<16xf32>
    %9 = vector.multi_reduction <add>, %8, %cst_2 [1] : vector<16x32xf32> to vector<16xf32>
    %10 = vector.shape_cast %9 : vector<16xf32> to vector<16x1xf32>
    %cst_3 = arith.constant 3.200000e+01 : f32
    %11 = vector.broadcast %cst_3 : f32 to vector<16x1xf32>
    %12 = arith.divf %10, %11 : vector<16x1xf32>
    %13 = vector.broadcast %5 : vector<16x1xf32> to vector<16x32xf32>
    %14 = arith.subf %1, %13 : vector<16x32xf32>
    %cst_4 = arith.constant 9.99999996E-13 : f32
    %15 = vector.broadcast %cst_4 : f32 to vector<16x1xf32>
    %16 = arith.addf %12, %15 : vector<16x1xf32>
    %17 = math.rsqrt %16 : vector<16x1xf32>
    %18 = vector.broadcast %17 : vector<16x1xf32> to vector<16x32xf32>
    %19 = arith.mulf %14, %18 : vector<16x32xf32>
    %c0_5 = arith.constant 0 : index
    %c0_6 = arith.constant 0 : index
    %20 = vector.load %arg2[%c0_5, %c0_6] : memref<1x32xf32, #tpu.memory_space<vmem>>, vector<1x32xf32>
    %21 = vector.broadcast %20 : vector<1x32xf32> to vector<16x32xf32>
    %22 = arith.mulf %19, %21 : vector<16x32xf32>
    %c0_7 = arith.constant 0 : index
    %c0_8 = arith.constant 0 : index
    %23 = vector.load %arg3[%c0_7, %c0_8] : memref<1x32xf32, #tpu.memory_space<vmem>>, vector<1x32xf32>
    %24 = vector.broadcast %23 : vector<1x32xf32> to vector<16x32xf32>
    %25 = arith.addf %22, %24 : vector<16x32xf32>
    %26 = arith.truncf %25 : vector<16x32xf32> to vector<16x32xbf16>
    %c0_9 = arith.constant 0 : index
    %c0_10 = arith.constant 0 : index
    %27 = vector.load %arg4[%c0_9, %c0_10] : memref<16x32xbf16, #tpu.memory_space<vmem>>, vector<16x32xbf16>
    tpu.vector_store %arg4[%c0_9, %c0_10], %26 {strides = array<i32>} : memref<16x32xbf16, #tpu.memory_space<vmem>>, vector<16x32xbf16>,
    return
  }
  func.func @transform_0(%arg0: i32) -> (i32, i32) {
    %c0_i32 = arith.constant 0 : i32
    %c0_i32_0 = arith.constant 0 : i32
    return %arg0, %c0_i32 : i32, i32
  }
  func.func @transform_1(%arg0: i32) -> (i32, i32) {
    %c0_i32 = arith.constant 0 : i32
    %c0_i32_0 = arith.constant 0 : i32
    %c0_i32_1 = arith.constant 0 : i32
    return %c0_i32, %c0_i32_0 : i32, i32
  }
  func.func @transform_2(%arg0: i32) -> (i32, i32) {
    %c0_i32 = arith.constant 0 : i32
    %c0_i32_0 = arith.constant 0 : i32
    %c0_i32_1 = arith.constant 0 : i32
    return %c0_i32, %c0_i32_0 : i32, i32
  }
  func.func @transform_3(%arg0: i32) -> (i32, i32) {
    %c0_i32 = arith.constant 0 : i32
    %c0_i32_0 = arith.constant 0 : i32
    return %arg0, %c0_i32 : i32, i32
  }
}

module attributes {stable_mosaic.version = 11 : i64} {
  func.func @_dense_ln_kernel(%arg0: i32, %arg1: memref<16x32xbf16, #tpu.memory_space<vmem>>, %arg2: memref<32x32xbf16, #tpu.memory_space<vmem>>, %arg3: memref<1x32xf32, #tpu.memory_space<vmem>>, %arg4: memref<16x32xbf16, #tpu.memory_space<vmem>>, %arg5: memref<1x32xf32, #tpu.memory_space<vmem>>, %arg6: memref<1x32xf32, #tpu.memory_space<vmem>>, %arg7: memref<16x32xbf16, #tpu.memory_space<vmem>>) attributes {dimension_semantics = [#tpu.dimension_semantics<parallel>], iteration_bounds = array<i64: 1>, scalar_prefetch = 0 : i64, scratch_operands = 0 : i64, tpu.core_type = #tpu.core_type<tc>, window_params = [{transform_indices = @transform_0, window_bounds = array<i64: 16, 32>}, {pipeline_mode = #tpu.pipeline_mode<synchronous>, transform_indices = @transform_1, window_bounds = array<i64: 32, 32>}, {pipeline_mode = #tpu.pipeline_mode<synchronous>, transform_indices = @transform_2, window_bounds = array<i64: 1, 32>}, {transform_indices = @transform_3, window_bounds = array<i64: 16, 32>}, {pipeline_mode = #tpu.pipeline_mode<synchronous>, transform_indices = @transform_4, window_bounds = array<i64: 1, 32>}, {pipeline_mode = #tpu.pipeline_mode<synchronous>, transform_indices = @transform_5, window_bounds = array<i64: 1, 32>}, {transform_indices = @transform_6, window_bounds = array<i64: 16, 32>}]} {
    %c0 = arith.constant 0 : index
    %c0_0 = arith.constant 0 : index
    %0 = vector.load %arg1[%c0, %c0_0] : memref<16x32xbf16, #tpu.memory_space<vmem>>, vector<16x32xbf16>
    %c0_1 = arith.constant 0 : index
    %c0_2 = arith.constant 0 : index
    %1 = vector.load %arg2[%c0_1, %c0_2] : memref<32x32xbf16, #tpu.memory_space<vmem>>, vector<32x32xbf16>
    %cst = arith.constant dense<0.000000e+00> : vector<16x32xf32>
    %2 = tpu.matmul %0, %1, %cst {dimension_numbers = #tpu.dot_dimension_numbers<[1], [0], [0], [1], [0, 0, 1, 1], [], []>} : vector<16x32xbf16>, vector<32x32xbf16>, vector<16x32xf32> -> vector<16x32xf32>
    %c0_3 = arith.constant 0 : index
    %c0_4 = arith.constant 0 : index
    %3 = vector.load %arg3[%c0_3, %c0_4] : memref<1x32xf32, #tpu.memory_space<vmem>>, vector<1x32xf32>
    %4 = vector.broadcast %3 : vector<1x32xf32> to vector<16x32xf32>
    %5 = arith.addf %2, %4 : vector<16x32xf32>
    %c0_5 = arith.constant 0 : index
    %c0_6 = arith.constant 0 : index
    %6 = vector.load %arg4[%c0_5, %c0_6] : memref<16x32xbf16, #tpu.memory_space<vmem>>, vector<16x32xbf16>
    %7 = arith.extf %6 : vector<16x32xbf16> to vector<16x32xf32>
    %8 = arith.addf %5, %7 : vector<16x32xf32>
    %cst_7 = arith.constant dense<0.000000e+00> : vector<16xf32>
    %9 = vector.multi_reduction <add>, %8, %cst_7 [1] : vector<16x32xf32> to vector<16xf32>
    %10 = vector.shape_cast %9 : vector<16xf32> to vector<16x1xf32>
    %cst_8 = arith.constant 3.200000e+01 : f32
    %11 = vector.broadcast %cst_8 : f32 to vector<16x1xf32>
    %12 = arith.divf %10, %11 : vector<16x1xf32>
    %13 = vector.broadcast %12 : vector<16x1xf32> to vector<16x32xf32>
    %14 = arith.subf %8, %13 : vector<16x32xf32>
    %15 = arith.mulf %14, %14 : vector<16x32xf32>
    %cst_9 = arith.constant dense<0.000000e+00> : vector<16xf32>
    %16 = vector.multi_reduction <add>, %15, %cst_9 [1] : vector<16x32xf32> to vector<16xf32>
    %17 = vector.shape_cast %16 : vector<16xf32> to vector<16x1xf32>
    %cst_10 = arith.constant 3.200000e+01 : f32
    %18 = vector.broadcast %cst_10 : f32 to vector<16x1xf32>
    %19 = arith.divf %17, %18 : vector<16x1xf32>
    %20 = vector.broadcast %12 : vector<16x1xf32> to vector<16x32xf32>
    %21 = arith.subf %8, %20 : vector<16x32xf32>
    %cst_11 = arith.constant 9.99999996E-13 : f32
    %22 = vector.broadcast %cst_11 : f32 to vector<16x1xf32>
    %23 = arith.addf %19, %22 : vector<16x1xf32>
    %24 = math.rsqrt %23 : vector<16x1xf32>
    %25 = vector.broadcast %24 : vector<16x1xf32> to vector<16x32xf32>
    %26 = arith.mulf %21, %25 : vector<16x32xf32>
    %c0_12 = arith.constant 0 : index
    %c0_13 = arith.constant 0 : index
    %27 = vector.load %arg5[%c0_12, %c0_13] : memref<1x32xf32, #tpu.memory_space<vmem>>, vector<1x32xf32>
    %28 = vector.broadcast %27 : vector<1x32xf32> to vector<16x32xf32>
    %29 = arith.mulf %26, %28 : vector<16x32xf32>
    %c0_14 = arith.constant 0 : index
    %c0_15 = arith.constant 0 : index
    %30 = vector.load %arg6[%c0_14, %c0_15] : memref<1x32xf32, #tpu.memory_space<vmem>>, vector<1x32xf32>
    %31 = vector.broadcast %30 : vector<1x32xf32> to vector<16x32xf32>
    %32 = arith.addf %29, %31 : vector<16x32xf32>
    %33 = arith.truncf %32 : vector<16x32xf32> to vector<16x32xbf16>
    %c0_16 = arith.constant 0 : index
    %c0_17 = arith.constant 0 : index
    %34 = vector.load %arg7[%c0_16, %c0_17] : memref<16x32xbf16, #tpu.memory_space<vmem>>, vector<16x32xbf16>
    tpu.vector_store %arg7[%c0_16, %c0_17], %33 {strides = array<i32>} : memref<16x32xbf16, #tpu.memory_space<vmem>>, vector<16x32xbf16>,
    return
  }
  func.func @transform_0(%arg0: i32) -> (i32, i32) {
    %c0_i32 = arith.constant 0 : i32
    %c0_i32_0 = arith.constant 0 : i32
    return %arg0, %c0_i32 : i32, i32
  }
  func.func @transform_1(%arg0: i32) -> (i32, i32) {
    %c0_i32 = arith.constant 0 : i32
    %c0_i32_0 = arith.constant 0 : i32
    %c0_i32_1 = arith.constant 0 : i32
    return %c0_i32, %c0_i32_0 : i32, i32
  }
  func.func @transform_2(%arg0: i32) -> (i32, i32) {
    %c0_i32 = arith.constant 0 : i32
    %c0_i32_0 = arith.constant 0 : i32
    %c0_i32_1 = arith.constant 0 : i32
    return %c0_i32, %c0_i32_0 : i32, i32
  }
  func.func @transform_3(%arg0: i32) -> (i32, i32) {
    %c0_i32 = arith.constant 0 : i32
    %c0_i32_0 = arith.constant 0 : i32
    return %arg0, %c0_i32 : i32, i32
  }
  func.func @transform_4(%arg0: i32) -> (i32, i32) {
    %c0_i32 = arith.constant 0 : i32
    %c0_i32_0 = arith.constant 0 : i32
    %c0_i32_1 = arith.constant 0 : i32
    return %c0_i32, %c0_i32_0 : i32, i32
  }
  func.func @transform_5(%arg0: i32) -> (i32, i32) {
    %c0_i32 = arith.constant 0 : i32
    %c0_i32_0 = arith.constant 0 : i32
    %c0_i32_1 = arith.constant 0 : i32
    return %c0_i32, %c0_i32_0 : i32, i32
  }
  func.func @transform_6(%arg0: i32) -> (i32, i32) {
    %c0_i32 = arith.constant 0 : i32
    %c0_i32_0 = arith.constant 0 : i32
    return %arg0, %c0_i32 : i32, i32
  }
}

module attributes {stable_mosaic.version = 11 : i64} {
  func.func @_dense_kernel(%arg0: i32, %arg1: memref<16x32xbf16, #tpu.memory_space<vmem>>, %arg2: memref<32x96xbf16, #tpu.memory_space<vmem>>, %arg3: memref<1x96xf32, #tpu.memory_space<vmem>>, %arg4: memref<16x96xbf16, #tpu.memory_space<vmem>>) attributes {dimension_semantics = [#tpu.dimension_semantics<parallel>], iteration_bounds = array<i64: 1>, scalar_prefetch = 0 : i64, scratch_operands = 0 : i64, tpu.core_type = #tpu.core_type<tc>, window_params = [{transform_indices = @transform_0, window_bounds = array<i64: 16, 32>}, {pipeline_mode = #tpu.pipeline_mode<synchronous>, transform_indices = @transform_1, window_bounds = array<i64: 32, 96>}, {pipeline_mode = #tpu.pipeline_mode<synchronous>, transform_indices = @transform_2, window_bounds = array<i64: 1, 96>}, {transform_indices = @transform_3, window_bounds = array<i64: 16, 96>}]} {
    %c0 = arith.constant 0 : index
    %c0_0 = arith.constant 0 : index
    %0 = vector.load %arg1[%c0, %c0_0] : memref<16x32xbf16, #tpu.memory_space<vmem>>, vector<16x32xbf16>
    %c0_1 = arith.constant 0 : index
    %c0_2 = arith.constant 0 : index
    %1 = vector.load %arg2[%c0_1, %c0_2] : memref<32x96xbf16, #tpu.memory_space<vmem>>, vector<32x96xbf16>
    %cst = arith.constant dense<0.000000e+00> : vector<16x96xf32>
    %2 = tpu.matmul %0, %1, %cst {dimension_numbers = #tpu.dot_dimension_numbers<[1], [0], [0], [1], [0, 0, 1, 1], [], []>} : vector<16x32xbf16>, vector<32x96xbf16>, vector<16x96xf32> -> vector<16x96xf32>
    %c0_3 = arith.constant 0 : index
    %c0_4 = arith.constant 0 : index
    %3 = vector.load %arg3[%c0_3, %c0_4] : memref<1x96xf32, #tpu.memory_space<vmem>>, vector<1x96xf32>
    %4 = vector.broadcast %3 : vector<1x96xf32> to vector<16x96xf32>
    %5 = arith.addf %2, %4 : vector<16x96xf32>
    %6 = arith.truncf %5 : vector<16x96xf32> to vector<16x96xbf16>
    %c0_5 = arith.constant 0 : index
    %c0_6 = arith.constant 0 : index
    %7 = vector.load %arg4[%c0_5, %c0_6] : memref<16x96xbf16, #tpu.memory_space<vmem>>, vector<16x96xbf16>
    tpu.vector_store %arg4[%c0_5, %c0_6], %6 {strides = array<i32>} : memref<16x96xbf16, #tpu.memory_space<vmem>>, vector<16x96xbf16>,
    return
  }
  func.func @transform_0(%arg0: i32) -> (i32, i32) {
    %c0_i32 = arith.constant 0 : i32
    %c0_i32_0 = arith.constant 0 : i32
    return %arg0, %c0_i32 : i32, i32
  }
  func.func @transform_1(%arg0: i32) -> (i32, i32) {
    %c0_i32 = arith.constant 0 : i32
    %c0_i32_0 = arith.constant 0 : i32
    %c0_i32_1 = arith.constant 0 : i32
    return %c0_i32, %c0_i32_0 : i32, i32
  }
  func.func @transform_2(%arg0: i32) -> (i32, i32) {
    %c0_i32 = arith.constant 0 : i32
    %c0_i32_0 = arith.constant 0 : i32
    %c0_i32_1 = arith.constant 0 : i32
    return %c0_i32, %c0_i32_0 : i32, i32
  }
  func.func @transform_3(%arg0: i32) -> (i32, i32) {
    %c0_i32 = arith.constant 0 : i32
    %c0_i32_0 = arith.constant 0 : i32
    return %arg0, %c0_i32 : i32, i32
  }
}

module attributes {stable_mosaic.version = 11 : i64} {
  func.func @_dense_kernel(%arg0: i32, %arg1: memref<16x32xbf16, #tpu.memory_space<vmem>>, %arg2: memref<32x64xbf16, #tpu.memory_space<vmem>>, %arg3: memref<1x64xf32, #tpu.memory_space<vmem>>, %arg4: memref<16x64xbf16, #tpu.memory_space<vmem>>) attributes {dimension_semantics = [#tpu.dimension_semantics<parallel>], iteration_bounds = array<i64: 1>, scalar_prefetch = 0 : i64, scratch_operands = 0 : i64, tpu.core_type = #tpu.core_type<tc>, window_params = [{transform_indices = @transform_0, window_bounds = array<i64: 16, 32>}, {pipeline_mode = #tpu.pipeline_mode<synchronous>, transform_indices = @transform_1, window_bounds = array<i64: 32, 64>}, {pipeline_mode = #tpu.pipeline_mode<synchronous>, transform_indices = @transform_2, window_bounds = array<i64: 1, 64>}, {transform_indices = @transform_3, window_bounds = array<i64: 16, 64>}]} {
    %c0 = arith.constant 0 : index
    %c0_0 = arith.constant 0 : index
    %0 = vector.load %arg1[%c0, %c0_0] : memref<16x32xbf16, #tpu.memory_space<vmem>>, vector<16x32xbf16>
    %c0_1 = arith.constant 0 : index
    %c0_2 = arith.constant 0 : index
    %1 = vector.load %arg2[%c0_1, %c0_2] : memref<32x64xbf16, #tpu.memory_space<vmem>>, vector<32x64xbf16>
    %cst = arith.constant dense<0.000000e+00> : vector<16x64xf32>
    %2 = tpu.matmul %0, %1, %cst {dimension_numbers = #tpu.dot_dimension_numbers<[1], [0], [0], [1], [0, 0, 1, 1], [], []>} : vector<16x32xbf16>, vector<32x64xbf16>, vector<16x64xf32> -> vector<16x64xf32>
    %c0_3 = arith.constant 0 : index
    %c0_4 = arith.constant 0 : index
    %3 = vector.load %arg3[%c0_3, %c0_4] : memref<1x64xf32, #tpu.memory_space<vmem>>, vector<1x64xf32>
    %4 = vector.broadcast %3 : vector<1x64xf32> to vector<16x64xf32>
    %5 = arith.addf %2, %4 : vector<16x64xf32>
    %6 = arith.mulf %5, %5 : vector<16x64xf32>
    %7 = arith.mulf %5, %6 : vector<16x64xf32>
    %cst_5 = arith.constant 4.471500e-02 : f32
    %8 = vector.broadcast %cst_5 : f32 to vector<16x64xf32>
    %9 = arith.mulf %8, %7 : vector<16x64xf32>
    %10 = arith.addf %5, %9 : vector<16x64xf32>
    %cst_6 = arith.constant 0.797884583 : f32
    %11 = vector.broadcast %cst_6 : f32 to vector<16x64xf32>
    %12 = arith.mulf %11, %10 : vector<16x64xf32>
    %13 = math.tanh %12 : vector<16x64xf32>
    %cst_7 = arith.constant 1.000000e+00 : f32
    %14 = vector.broadcast %cst_7 : f32 to vector<16x64xf32>
    %15 = arith.addf %14, %13 : vector<16x64xf32>
    %cst_8 = arith.constant 5.000000e-01 : f32
    %16 = vector.broadcast %cst_8 : f32 to vector<16x64xf32>
    %17 = arith.mulf %16, %15 : vector<16x64xf32>
    %18 = arith.mulf %5, %17 : vector<16x64xf32>
    %19 = arith.truncf %18 : vector<16x64xf32> to vector<16x64xbf16>
    %c0_9 = arith.constant 0 : index
    %c0_10 = arith.constant 0 : index
    %20 = vector.load %arg4[%c0_9, %c0_10] : memref<16x64xbf16, #tpu.memory_space<vmem>>, vector<16x64xbf16>
    tpu.vector_store %arg4[%c0_9, %c0_10], %19 {strides = array<i32>} : memref<16x64xbf16, #tpu.memory_space<vmem>>, vector<16x64xbf16>,
    return
  }
  func.func @transform_0(%arg0: i32) -> (i32, i32) {
    %c0_i32 = arith.constant 0 : i32
    %c0_i32_0 = arith.constant 0 : i32
    return %arg0, %c0_i32 : i32, i32
  }
  func.func @transform_1(%arg0: i32) -> (i32, i32) {
    %c0_i32 = arith.constant 0 : i32
    %c0_i32_0 = arith.constant 0 : i32
    %c0_i32_1 = arith.constant 0 : i32
    return %c0_i32, %c0_i32_0 : i32, i32
  }
  func.func @transform_2(%arg0: i32) -> (i32, i32) {
    %c0_i32 = arith.constant 0 : i32
    %c0_i32_0 = arith.constant 0 : i32
    %c0_i32_1 = arith.constant 0 : i32
    return %c0_i32, %c0_i32_0 : i32, i32
  }
  func.func @transform_3(%arg0: i32) -> (i32, i32) {
    %c0_i32 = arith.constant 0 : i32
    %c0_i32_0 = arith.constant 0 : i32
    return %arg0, %c0_i32 : i32, i32
  }
}

module attributes {stable_mosaic.version = 11 : i64} {
  func.func @_dense_kernel(%arg0: i32, %arg1: memref<16x32xbf16, #tpu.memory_space<vmem>>, %arg2: memref<32x128xbf16, #tpu.memory_space<vmem>>, %arg3: memref<1x128xf32, #tpu.memory_space<vmem>>, %arg4: memref<16x128xbf16, #tpu.memory_space<vmem>>) attributes {dimension_semantics = [#tpu.dimension_semantics<parallel>], iteration_bounds = array<i64: 1>, scalar_prefetch = 0 : i64, scratch_operands = 0 : i64, tpu.core_type = #tpu.core_type<tc>, window_params = [{transform_indices = @transform_0, window_bounds = array<i64: 16, 32>}, {pipeline_mode = #tpu.pipeline_mode<synchronous>, transform_indices = @transform_1, window_bounds = array<i64: 32, 128>}, {pipeline_mode = #tpu.pipeline_mode<synchronous>, transform_indices = @transform_2, window_bounds = array<i64: 1, 128>}, {transform_indices = @transform_3, window_bounds = array<i64: 16, 128>}]} {
    %c0 = arith.constant 0 : index
    %c0_0 = arith.constant 0 : index
    %0 = vector.load %arg1[%c0, %c0_0] : memref<16x32xbf16, #tpu.memory_space<vmem>>, vector<16x32xbf16>
    %c0_1 = arith.constant 0 : index
    %c0_2 = arith.constant 0 : index
    %1 = vector.load %arg2[%c0_1, %c0_2] : memref<32x128xbf16, #tpu.memory_space<vmem>>, vector<32x128xbf16>
    %cst = arith.constant dense<0.000000e+00> : vector<16x128xf32>
    %2 = tpu.matmul %0, %1, %cst {dimension_numbers = #tpu.dot_dimension_numbers<[1], [0], [0], [1], [0, 0, 1, 1], [], []>} : vector<16x32xbf16>, vector<32x128xbf16>, vector<16x128xf32> -> vector<16x128xf32>
    %c0_3 = arith.constant 0 : index
    %c0_4 = arith.constant 0 : index
    %3 = vector.load %arg3[%c0_3, %c0_4] : memref<1x128xf32, #tpu.memory_space<vmem>>, vector<1x128xf32>
    %4 = vector.broadcast %3 : vector<1x128xf32> to vector<16x128xf32>
    %5 = arith.addf %2, %4 : vector<16x128xf32>
    %6 = arith.truncf %5 : vector<16x128xf32> to vector<16x128xbf16>
    %c0_5 = arith.constant 0 : index
    %c0_6 = arith.constant 0 : index
    %7 = vector.load %arg4[%c0_5, %c0_6] : memref<16x128xbf16, #tpu.memory_space<vmem>>, vector<16x128xbf16>
    tpu.vector_store %arg4[%c0_5, %c0_6], %6 {strides = array<i32>} : memref<16x128xbf16, #tpu.memory_space<vmem>>, vector<16x128xbf16>,
    return
  }
  func.func @transform_0(%arg0: i32) -> (i32, i32) {
    %c0_i32 = arith.constant 0 : i32
    %c0_i32_0 = arith.constant 0 : i32
    return %arg0, %c0_i32 : i32, i32
  }
  func.func @transform_1(%arg0: i32) -> (i32, i32) {
    %c0_i32 = arith.constant 0 : i32
    %c0_i32_0 = arith.constant 0 : i32
    %c0_i32_1 = arith.constant 0 : i32
    return %c0_i32, %c0_i32_0 : i32, i32
  }
  func.func @transform_2(%arg0: i32) -> (i32, i32) {
    %c0_i32 = arith.constant 0 : i32
    %c0_i32_0 = arith.constant 0 : i32
    %c0_i32_1 = arith.constant 0 : i32
    return %c0_i32, %c0_i32_0 : i32, i32
  }
  func.func @transform_3(%arg0: i32) -> (i32, i32) {
    %c0_i32 = arith.constant 0 : i32
    %c0_i32_0 = arith.constant 0 : i32
    return %arg0, %c0_i32 : i32, i32
  }
}

module attributes {stable_mosaic.version = 11 : i64} {
  func.func @_dense_ln_kernel(%arg0: i32, %arg1: memref<16x64xbf16, #tpu.memory_space<vmem>>, %arg2: memref<64x32xbf16, #tpu.memory_space<vmem>>, %arg3: memref<1x32xf32, #tpu.memory_space<vmem>>, %arg4: memref<16x32xbf16, #tpu.memory_space<vmem>>, %arg5: memref<1x32xf32, #tpu.memory_space<vmem>>, %arg6: memref<1x32xf32, #tpu.memory_space<vmem>>, %arg7: memref<16x32xbf16, #tpu.memory_space<vmem>>) attributes {dimension_semantics = [#tpu.dimension_semantics<parallel>], iteration_bounds = array<i64: 1>, scalar_prefetch = 0 : i64, scratch_operands = 0 : i64, tpu.core_type = #tpu.core_type<tc>, window_params = [{transform_indices = @transform_0, window_bounds = array<i64: 16, 64>}, {pipeline_mode = #tpu.pipeline_mode<synchronous>, transform_indices = @transform_1, window_bounds = array<i64: 64, 32>}, {pipeline_mode = #tpu.pipeline_mode<synchronous>, transform_indices = @transform_2, window_bounds = array<i64: 1, 32>}, {transform_indices = @transform_3, window_bounds = array<i64: 16, 32>}, {pipeline_mode = #tpu.pipeline_mode<synchronous>, transform_indices = @transform_4, window_bounds = array<i64: 1, 32>}, {pipeline_mode = #tpu.pipeline_mode<synchronous>, transform_indices = @transform_5, window_bounds = array<i64: 1, 32>}, {transform_indices = @transform_6, window_bounds = array<i64: 16, 32>}]} {
    %c0 = arith.constant 0 : index
    %c0_0 = arith.constant 0 : index
    %0 = vector.load %arg1[%c0, %c0_0] : memref<16x64xbf16, #tpu.memory_space<vmem>>, vector<16x64xbf16>
    %c0_1 = arith.constant 0 : index
    %c0_2 = arith.constant 0 : index
    %1 = vector.load %arg2[%c0_1, %c0_2] : memref<64x32xbf16, #tpu.memory_space<vmem>>, vector<64x32xbf16>
    %cst = arith.constant dense<0.000000e+00> : vector<16x32xf32>
    %2 = tpu.matmul %0, %1, %cst {dimension_numbers = #tpu.dot_dimension_numbers<[1], [0], [0], [1], [0, 0, 1, 1], [], []>} : vector<16x64xbf16>, vector<64x32xbf16>, vector<16x32xf32> -> vector<16x32xf32>
    %c0_3 = arith.constant 0 : index
    %c0_4 = arith.constant 0 : index
    %3 = vector.load %arg3[%c0_3, %c0_4] : memref<1x32xf32, #tpu.memory_space<vmem>>, vector<1x32xf32>
    %4 = vector.broadcast %3 : vector<1x32xf32> to vector<16x32xf32>
    %5 = arith.addf %2, %4 : vector<16x32xf32>
    %c0_5 = arith.constant 0 : index
    %c0_6 = arith.constant 0 : index
    %6 = vector.load %arg4[%c0_5, %c0_6] : memref<16x32xbf16, #tpu.memory_space<vmem>>, vector<16x32xbf16>
    %7 = arith.extf %6 : vector<16x32xbf16> to vector<16x32xf32>
    %8 = arith.addf %5, %7 : vector<16x32xf32>
    %cst_7 = arith.constant dense<0.000000e+00> : vector<16xf32>
    %9 = vector.multi_reduction <add>, %8, %cst_7 [1] : vector<16x32xf32> to vector<16xf32>
    %10 = vector.shape_cast %9 : vector<16xf32> to vector<16x1xf32>
    %cst_8 = arith.constant 3.200000e+01 : f32
    %11 = vector.broadcast %cst_8 : f32 to vector<16x1xf32>
    %12 = arith.divf %10, %11 : vector<16x1xf32>
    %13 = vector.broadcast %12 : vector<16x1xf32> to vector<16x32xf32>
    %14 = arith.subf %8, %13 : vector<16x32xf32>
    %15 = arith.mulf %14, %14 : vector<16x32xf32>
    %cst_9 = arith.constant dense<0.000000e+00> : vector<16xf32>
    %16 = vector.multi_reduction <add>, %15, %cst_9 [1] : vector<16x32xf32> to vector<16xf32>
    %17 = vector.shape_cast %16 : vector<16xf32> to vector<16x1xf32>
    %cst_10 = arith.constant 3.200000e+01 : f32
    %18 = vector.broadcast %cst_10 : f32 to vector<16x1xf32>
    %19 = arith.divf %17, %18 : vector<16x1xf32>
    %20 = vector.broadcast %12 : vector<16x1xf32> to vector<16x32xf32>
    %21 = arith.subf %8, %20 : vector<16x32xf32>
    %cst_11 = arith.constant 9.99999996E-13 : f32
    %22 = vector.broadcast %cst_11 : f32 to vector<16x1xf32>
    %23 = arith.addf %19, %22 : vector<16x1xf32>
    %24 = math.rsqrt %23 : vector<16x1xf32>
    %25 = vector.broadcast %24 : vector<16x1xf32> to vector<16x32xf32>
    %26 = arith.mulf %21, %25 : vector<16x32xf32>
    %c0_12 = arith.constant 0 : index
    %c0_13 = arith.constant 0 : index
    %27 = vector.load %arg5[%c0_12, %c0_13] : memref<1x32xf32, #tpu.memory_space<vmem>>, vector<1x32xf32>
    %28 = vector.broadcast %27 : vector<1x32xf32> to vector<16x32xf32>
    %29 = arith.mulf %26, %28 : vector<16x32xf32>
    %c0_14 = arith.constant 0 : index
    %c0_15 = arith.constant 0 : index
    %30 = vector.load %arg6[%c0_14, %c0_15] : memref<1x32xf32, #tpu.memory_space<vmem>>, vector<1x32xf32>
    %31 = vector.broadcast %30 : vector<1x32xf32> to vector<16x32xf32>
    %32 = arith.addf %29, %31 : vector<16x32xf32>
    %33 = arith.truncf %32 : vector<16x32xf32> to vector<16x32xbf16>
    %c0_16 = arith.constant 0 : index
    %c0_17 = arith.constant 0 : index
    %34 = vector.load %arg7[%c0_16, %c0_17] : memref<16x32xbf16, #tpu.memory_space<vmem>>, vector<16x32xbf16>
    tpu.vector_store %arg7[%c0_16, %c0_17], %33 {strides = array<i32>} : memref<16x32xbf16, #tpu.memory_space<vmem>>, vector<16x32xbf16>,
    return
  }
  func.func @transform_0(%arg0: i32) -> (i32, i32) {
    %c0_i32 = arith.constant 0 : i32
    %c0_i32_0 = arith.constant 0 : i32
    return %arg0, %c0_i32 : i32, i32
  }
  func.func @transform_1(%arg0: i32) -> (i32, i32) {
    %c0_i32 = arith.constant 0 : i32
    %c0_i32_0 = arith.constant 0 : i32
    %c0_i32_1 = arith.constant 0 : i32
    return %c0_i32, %c0_i32_0 : i32, i32
  }
  func.func @transform_2(%arg0: i32) -> (i32, i32) {
    %c0_i32 = arith.constant 0 : i32
    %c0_i32_0 = arith.constant 0 : i32
    %c0_i32_1 = arith.constant 0 : i32
    return %c0_i32, %c0_i32_0 : i32, i32
  }
  func.func @transform_3(%arg0: i32) -> (i32, i32) {
    %c0_i32 = arith.constant 0 : i32
    %c0_i32_0 = arith.constant 0 : i32
    return %arg0, %c0_i32 : i32, i32
  }
  func.func @transform_4(%arg0: i32) -> (i32, i32) {
    %c0_i32 = arith.constant 0 : i32
    %c0_i32_0 = arith.constant 0 : i32
    %c0_i32_1 = arith.constant 0 : i32
    return %c0_i32, %c0_i32_0 : i32, i32
  }
  func.func @transform_5(%arg0: i32) -> (i32, i32) {
    %c0_i32 = arith.constant 0 : i32
    %c0_i32_0 = arith.constant 0 : i32
    %c0_i32_1 = arith.constant 0 : i32
    return %c0_i32, %c0_i32_0 : i32, i32
  }
  func.func @transform_6(%arg0: i32) -> (i32, i32) {
    %c0_i32 = arith.constant 0 : i32
    %c0_i32_0 = arith.constant 0 : i32
    return %arg0, %c0_i32 : i32, i32
  }
}

</mosaic_0001>

<bundles_post_ra>
// kernel: _lambda_.12
= control target key start
LH: loop header
LB: loop body
LE: loop exit
PB: predicated region body
PF: predicated region fallthrough
CT: control target
= control target key end

     0   :  { %vm18_vm0 = vcmask 261120   ;;  %vm72_vm1 = vcmask 257024   ;;  %s132_s0 = inlined_call_operand.vmem [shape: bf16[16,32], index: 0, kind: input, shape index: {}]   ;;  %s133_s1 = inlined_call_operand.vmem [shape: f32[1,32], index: 1, kind: input, shape index: {}]   ;;  %s134_s2 = inlined_call_operand.vmem [shape: f32[1,32], index: 2, kind: input, shape index: {}]   ;;  %s135_s3 = inlined_call_operand.vmem [shape: bf16[16,32], index: 3, kind: output, shape index: {}]  }
   0x1   :  { %v86_v0 = vld [vmem:[%s132_s0] sm:$0xff]  }
   0x2   :  { %v87_v1 = vunpack.c.l.bf16 %v86_v0  ;;  %v88_v2 = vunpack.c.h.bf16 %v86_v0  ;;  %v79_v22 = vld [vmem:[%s133_s1] ss:$0 sm:$0xff] }
   0x3   :  { %v80_v24 = vld [vmem:[%s134_s2] ss:$0 sm:$0xff] }
   0x4   :  { %v19_v3 = vsel %vm18_vm0, %v87_v1, 0.0  ;;  %v22_v4 = vsel %vm18_vm0, %v88_v2, 0.0 }
   0x5   :  { %20 = vadd.xlane.f32.xlu0 %v19_v3 }
   0x9   :  { %23 = vadd.xlane.f32.xlu0 %v22_v4 }
  0x92   :  { %v21_v5 = vpop.xlane.xlu0 %20 }
  0x93   :  { %v26_v6 = vmul.f32 0.03125, %v21_v5 }
  0x95   :  { %v28_v7 = vsub.f32 %v87_v1, %v26_v6 }
  0x96   :  { %v24_v8 = vpop.xlane.xlu0 %23 }
  0x97   :  { %v27_v9 = vmul.f32 0.03125, %v24_v8  ;;  %v30_v10 = vmul.f32 %v28_v7, %v28_v7 }
  0x99   :  { %v29_v11 = vsub.f32 %v88_v2, %v27_v9  ;;  %v32_v12 = vsel %vm18_vm0, %v30_v10, 0.0 }
  0x9a   :  { %33 = vadd.xlane.f32.xlu1 %v32_v12 }
  0x9b   :  { %v31_v13 = vmul.f32 %v29_v11, %v29_v11 }
  0x9d   :  { %v35_v14 = vsel %vm18_vm0, %v31_v13, 0.0 }
  0x9e   :  { %36 = vadd.xlane.f32.xlu1 %v35_v14 }
 0x127   :  { %v34_v15 = vpop.xlane.xlu1 %33 }
 0x128   :  { %v38_v16 = vmul.f32 0.03125, %v34_v15 }
 0x12a   :  { %v40_v17 = vadd.f32 1e-12, %v38_v16 }
 0x12b   :  { %v37_v18 = vpop.xlane.xlu1 %36 }
 0x12c   :  { %89 = vrsqrt.f32 %v40_v17  ;;  %v39_v19 = vmul.f32 0.03125, %v37_v18 }
 0x12e   :  { %v41_v20 = vadd.f32 1e-12, %v39_v19 }
 0x130   :  { %91 = vrsqrt.f32 %v41_v20 }
 0x136   :  { %v90_v21 = vpop.eup %89 }
 0x137   :  { %v44_v23 = vmul.f32 %v90_v21, %v28_v7 }
 0x139   :  { %v53_v25 = vmul.f32 %v79_v22, %v44_v23 }
 0x13a   :  { %v92_v26 = vpop.eup %91 }
 0x13b   :  { %v62_v27 = vadd.f32 %v80_v24, %v53_v25  ;;  %v45_v28 = vmul.f32 %v92_v26, %v29_v11 }
 0x13d   :  { %v83_v29 = vpack.c.bf16 %v62_v27, %v62_v27  ;;  %v54_v30 = vmul.f32 %v79_v22, %v45_v28 }
 0x13f   :  { %73 = vst.msk [vmem:[%s135_s3] sm:$0xf] %vm72_vm1, %v83_v29  ;;  %v63_v31 = vadd.f32 %v80_v24, %v54_v30 }
 0x141   :  { %v84_v32 = vpack.c.bf16 %v63_v31, %v63_v31 }
 0x143   :  { %74 = vst.msk [vmem:[%s135_s3 + $0x4] sm:$0xf] %vm72_vm1, %v84_v32 }

// kernel: _lambda_.13
= control target key start
LH: loop header
LB: loop body
LE: loop exit
PB: predicated region body
PF: predicated region fallthrough
CT: control target
= control target key end

     0   :  { %v130_v0 = vmov 0.0   ;;  %vm131_vm0 = vmmov 0   ;;  %vm45_vm1 = vcmask 261120   ;;  %vm98_vm2 = vcmask 781312   ;;  %s170_s1 = inlined_call_operand.vmem [shape: bf16[32,96], index: 1, kind: input, shape index: {}]   ;;  %s171_s0 = inlined_call_operand.vmem [shape: bf16[16,32], index: 0, kind: input, shape index: {}]   ;;  %s172_s2 = inlined_call_operand.vmem [shape: f32[1,96], index: 2, kind: input, shape index: {}]   ;;  %s173_s3 = inlined_call_operand.vmem [shape: bf16[16,96], index: 3, kind: output, shape index: {}]  }
   0x1   :  { %117 = vmatprep.subr.bf16.mxu0 %v130_v0  ;;  %v127_v1 = vld [vmem:[%s170_s1] sm:$0xff]   ;;  %121 = vmatprep.mubr.msk.bf16.mxu0 %vm131_vm0, %v130_v0  ;;  %v128_v2 = vld [vmem:[%s170_s1 + $0x8] sm:$0xff]  }
   0x2   :  { %118 = vmatpush3.bf16.msra.mxu0 %v127_v1  ;;  %v129_v3 = vld [vmem:[%s171_s0] sm:$0xff]  }
   0x3   :  { %119 = vmatprep.subr.bf16.mxu0 %v130_v0  ;;  %v105_v4 = vld [vmem:[%s172_s2] ss:$0 sm:$0xff] }
   0x6   :  { %120 = vmatpush3.bf16.msra.mxu0 %v128_v2 }
   0x9   :  { %122 = vmatmul.mubr.msk.bf16.vlgmr.msra.gmra.mrb[0].mxu0 %vm45_vm1, %v129_v3 }
  0xdc   :  { %v83_v5 = vpop.f32.mrb[0].mxu0 }
  0xdd   :  { %v84_v6 = vadd.f32 %v105_v4, %v83_v5  ;;  %v123_v7 = vpop.f32.mrb[1].mxu0 }
  0xde   :  { %v86_v8 = vpop.f32.mrb[2].mxu0 }
  0xdf   :  { %v112_v9 = vpack.c.bf16 %v84_v6, %v84_v6  ;;  %v87_v10 = vadd.f32 %v105_v4, %v86_v8  ;;  %v124_v11 = vpop.f32.mrb[3].mxu0 }
  0xe1   :  { %99 = vst.msk [vmem:[%s173_s3] sm:$0xf] %vm98_vm2, %v112_v9  ;;  %v113_v12 = vpack.c.bf16 %v87_v10, %v87_v10 }
  0xe3   :  { %100 = vst.msk [vmem:[%s173_s3 + $0x4] sm:$0xf] %vm98_vm2, %v113_v12 }

// kernel: _lambda_.15
= control target key start
LH: loop header
LB: loop body
LE: loop exit
PB: predicated region body
PF: predicated region fallthrough
CT: control target
= control target key end

     0   :  { %v200_v0 = vmov 0.0   ;;  %vm201_vm0 = vmmov 0   ;;  %vm54_vm1 = vcmask 261120   ;;  %vm158_vm2 = vcmask 257024   ;;  %s269_s1 = inlined_call_operand.vmem [shape: bf16[32,32], index: 1, kind: input, shape index: {}]   ;;  %s270_s0 = inlined_call_operand.vmem [shape: bf16[16,32], index: 0, kind: input, shape index: {}]   ;;  %s271_s3 = inlined_call_operand.vmem [shape: bf16[16,32], index: 3, kind: input, shape index: {}]   ;;  %s272_s2 = inlined_call_operand.vmem [shape: f32[1,32], index: 2, kind: input, shape index: {}]   ;;  %s273_s4 = inlined_call_operand.vmem [shape: f32[1,32], index: 4, kind: input, shape index: {}]   ;;  %s274_s5 = inlined_call_operand.vmem [shape: f32[1,32], index: 5, kind: input, shape index: {}]   ;;  %s275_s6 = inlined_call_operand.vmem [shape: bf16[16,32], index: 6, kind: output, shape index: {}]  }
   0x1   :  { %183 = vmatprep.subr.bf16.mxu0 %v200_v0  ;;  %v193_v1 = vld [vmem:[%s269_s1] sm:$0xff]   ;;  %187 = vmatprep.mubr.msk.bf16.mxu0 %vm201_vm0, %v200_v0  ;;  %v194_v2 = vld [vmem:[%s269_s1 + $0x8] sm:$0xff]  }
   0x2   :  { %184 = vmatpush3.bf16.msra.mxu0 %v193_v1  ;;  %v195_v3 = vld [vmem:[%s270_s0] sm:$0xff]  }
   0x3   :  { %185 = vmatprep.subr.bf16.mxu0 %v200_v0  ;;  %v177_v4 = vld [vmem:[%s271_s3] sm:$0xff]  }
   0x4   :  { %v165_v5 = vld [vmem:[%s272_s2] ss:$0 sm:$0xff]  ;;  %v178_v6 = vunpack.c.l.bf16 %v177_v4  ;;  %v179_v10 = vunpack.c.h.bf16 %v177_v4 }
   0x5   :  { %v170_v35 = vld [vmem:[%s273_s4] ss:$0 sm:$0xff] }
   0x6   :  { %186 = vmatpush3.bf16.msra.mxu0 %v194_v2  ;;  %v171_v37 = vld [vmem:[%s274_s5] ss:$0 sm:$0xff] }
   0x9   :  { %188 = vmatmul.mubr.msk.bf16.vlgmr.msra.gmra.mrb[0].mxu0 %vm54_vm1, %v195_v3 }
  0xdc   :  { %v92_v7 = vpop.f32.mrb[0].mxu0 }
  0xdd   :  { %v93_v8 = vadd.f32 %v165_v5, %v92_v7  ;;  %v189_v9 = vpop.f32.mrb[1].mxu0 }
  0xde   :  { %v95_v11 = vpop.f32.mrb[2].mxu0 }
  0xdf   :  { %v96_v12 = vadd.f32 %v165_v5, %v95_v11  ;;  %v190_v13 = vpop.f32.mrb[3].mxu0  ;;  %v103_v14 = vadd.f32 %v178_v6, %v93_v8 }
  0xe1   :  { %v105_v15 = vsel %vm54_vm1, %v103_v14, 0.0  ;;  %v104_v16 = vadd.f32 %v179_v10, %v96_v12 }
  0xe2   :  { %106 = vadd.xlane.f32.xlu0 %v105_v15 }
  0xe3   :  { %v108_v17 = vsel %vm54_vm1, %v104_v16, 0.0 }
  0xe6   :  { %109 = vadd.xlane.f32.xlu0 %v108_v17 }
 0x16f   :  { %v107_v18 = vpop.xlane.xlu0 %106 }
 0x170   :  { %v112_v19 = vmul.f32 0.03125, %v107_v18 }
 0x172   :  { %v114_v20 = vsub.f32 %v103_v14, %v112_v19 }
 0x173   :  { %v110_v21 = vpop.xlane.xlu0 %109 }
 0x174   :  { %v113_v22 = vmul.f32 0.03125, %v110_v21  ;;  %v116_v23 = vmul.f32 %v114_v20, %v114_v20 }
 0x176   :  { %v115_v24 = vsub.f32 %v104_v16, %v113_v22  ;;  %v118_v25 = vsel %vm54_vm1, %v116_v23, 0.0 }
 0x177   :  { %119 = vadd.xlane.f32.xlu1 %v118_v25 }
 0x178   :  { %v117_v26 = vmul.f32 %v115_v24, %v115_v24 }
 0x17a   :  { %v121_v27 = vsel %vm54_vm1, %v117_v26, 0.0 }
 0x17b   :  { %122 = vadd.xlane.f32.xlu1 %v121_v27 }
 0x204   :  { %v120_v28 = vpop.xlane.xlu1 %119 }
 0x205   :  { %v124_v29 = vmul.f32 0.03125, %v120_v28 }
 0x207   :  { %v126_v30 = vadd.f32 1e-12, %v124_v29 }
 0x208   :  { %v123_v31 = vpop.xlane.xlu1 %122 }
 0x209   :  { %196 = vrsqrt.f32 %v126_v30  ;;  %v125_v32 = vmul.f32 0.03125, %v123_v31 }
 0x20b   :  { %v127_v33 = vadd.f32 1e-12, %v125_v32 }
 0x20d   :  { %198 = vrsqrt.f32 %v127_v33 }
 0x213   :  { %v197_v34 = vpop.eup %196 }
 0x214   :  { %v130_v36 = vmul.f32 %v197_v34, %v114_v20 }
 0x216   :  { %v139_v38 = vmul.f32 %v170_v35, %v130_v36 }
 0x217   :  { %v199_v39 = vpop.eup %198 }
 0x218   :  { %v148_v40 = vadd.f32 %v171_v37, %v139_v38  ;;  %v131_v41 = vmul.f32 %v199_v39, %v115_v24 }
 0x21a   :  { %v174_v42 = vpack.c.bf16 %v148_v40, %v148_v40  ;;  %v140_v43 = vmul.f32 %v170_v35, %v131_v41 }
 0x21c   :  { %159 = vst.msk [vmem:[%s275_s6] sm:$0xf] %vm158_vm2, %v174_v42  ;;  %v149_v44 = vadd.f32 %v171_v37, %v140_v43 }
 0x21e   :  { %v175_v45 = vpack.c.bf16 %v149_v44, %v149_v44 }
 0x220   :  { %160 = vst.msk [vmem:[%s275_s6 + $0x4] sm:$0xf] %vm158_vm2, %v175_v45 }

// kernel: _lambda_.14
= control target key start
LH: loop header
LB: loop body
LE: loop exit
PB: predicated region body
PF: predicated region fallthrough
CT: control target
= control target key end

     0   :  { %s565_s9 = smov 0   ;;  %s616_s0 = inlined_call_operand.vmem [shape: bf16[2,8,96], index: 0, kind: input, shape index: {}]   ;;  %s617_s1 = inlined_call_operand.vmem [shape: f32[2,1,8], index: 1, kind: input, shape index: {}]   ;;  %s618_s2 = inlined_call_operand.vmem [shape: bf16[2,8,32], index: 2, kind: output, shape index: {}]  }
   0x1 LB: > { %s461_s10 = sadd.s32 4294967295, %s540_s9   ;;  %p465_p0 = scmp.ge.s32.totalorder %s540_s9, 1  ;;  %s540_s9 = sphi %s565_s9, %s12_s9  }
   0x2   : > { %p119_p1 = scmp.lt.s32.totalorder %s540_s9, 3 }
   0x4   : > { %p120_p2 = pnand %p465_p0, %p119_p1 }
   0x5   : > { %p142_p3 = scmp.lt.s32.totalorder (!%p120_p2), %s461_s10, 1  ;;  %v542_v0 = vmov (!%p120_p2), 0.0   ;;  %vm543_vm0 = vmmov (!%p120_p2), 0   ;;  %s544_s15 = smov (!%p120_p2), 96   ;;  %vm169_vm1 = vcmask (!%p120_p2), 130048   ;;  %vm216_vm2 = vcmask (!%p120_p2), 64512  }
   0x6   : > { %123 = sbr.rel (%p120_p2) target bundleno = 1541 (0x605), region = 28  ;;  %485 = vmatprep.subr.bf16.mxu0 (!%p120_p2), %v542_v0  ;;  %487 = vmatprep.mubr.msk.bf16.mxu0 (!%p120_p2), %vm543_vm0, %v542_v0  ;;  %s545_s16 = smov (!%p120_p2), 64   ;;  %vm234_vm3 = vcmask (!%p120_p2), 1043456   ;;  %vm397_vm4 = vcmask (!%p120_p2), 257024  }
   0x7   : > { %491 = vmatprep.subr.bf16.mxu1 (!%p120_p2), %v542_v0  ;;  %493 = vmatprep.mubr.msk.bf16.mxu1 (!%p120_p2), %vm543_vm0, %v542_v0  ;;  %s546_s20 = smov (!%p120_p2), 80   ;;  %s547_s21 = smov (!%p120_p2), 112  }
   0x8   : > { %s548_s22 = smov (!%p120_p2), 48   ;;  %s549_s23 = smov (!%p120_p2), 16  }
   0xd   : > { %s620_s10 = smov (!%p142_p3, %s461_s10), 1 }
   0xe   : > { %s466_s11 = sshll.u32 %s620_s10, 2  ;;  %s148_s19 = scalar_lea.vmem %s617_s1, %s620_s10 }
   0xf   : > { %s145_s14 = scalar_lea.vmem %s616_s0, %s466_s11  ;;  %v468_v6 = vld [vmem:[%s148_s19] ss:$0 sm:$0xff]  ;;  %s152_s26 = scalar_lea.vmem %s618_s2, %s466_s11 }
  0x10   : > { %v155_v1 = vld [vmem:[%s145_s14] sm:$0xf] }
  0x11   : > { %v583_v2 = vcombine.low %v155_v1, %v155_v1  ;;  %v157_v5 = vmul.bf16 1048592000, %v155_v1 }
  0x13   : > { %167 = vrot.lane.b32.xlu0 %v583_v2, %s544_s15  ;;  %229 = vrot.lane.b32.xlu1 %v583_v2, %s545_s16  ;;  %v472_v20 = vcombine.low %v157_v5, %v157_v5 }
  0x85   : > { %v168_v3 = vpop.permute.xlu0 %167  ;;  %v230_v13 = vpop.permute.xlu1 %229 }
  0x86   : > { %v174_v4 = vsel %vm169_vm1, %v168_v3, 0  ;;  %v236_v14 = vsel %vm234_vm3, %v230_v13, 0 }
  0x87   : > { %486 = vmatpush3.bf16.xpose.msra.mxu0 %v174_v4  ;;  %492 = vmatpush3.bf16.msra.mxu1 %v236_v14 }
  0x88   : > { %503 = vmatprep.subr.bf16.mxu0 %v542_v0  ;;  %497 = vmatprep.subr.bf16.mxu1 %v542_v0 }
  0x8e   : > { %488 = vmatmul.mubr.msk.bf16.vlgmr.msra.gmra.mrb[0].mxu0 %vm169_vm1, %v157_v5 }
  0x8f   : > { %505 = vmatprep.mubr.msk.bf16.mxu0 %vm543_vm0, %v542_v0 }
 0x161   : > { %v210_v7 = vpop.f32.mrb[0].mxu0 }
 0x162   : > { %v211_v8 = vadd.f32 %v468_v6, %v210_v7  ;;  %v489_v9 = vpop.f32.mrb[1].mxu0 }
 0x163   : > { %v213_v10 = vpop.f32.mrb[2].mxu0 }
 0x164   : > { %v490_v11 = vpop.f32.mrb[3].mxu0  ;;  %v217_v12 = vsel %vm216_vm2, %v211_v8, -inf }
 0x165   : > { %218 = vmax.xlane.f32.xlu0 %v217_v12 }
 0x1f2   : > { %v219_v15 = vpop.xlane.xlu0 %218 }
 0x1f3   : > { %v220_v16 = vsub.f32 %v211_v8, %v219_v15 }
 0x1f5   : > { %v221_v17 = vmul.f32 1.442695, %v220_v16 }
 0x1f7   : > { %526 = vpow2.f32 %v221_v17 }
 0x201   : > { %v527_v18 = vpop.eup %526 }
 0x202   : > { %v223_v19 = vsel %vm216_vm2, %v527_v18, 0.0 }
 0x203   : > { %224 = vadd.xlane.f32.xlu1 %v223_v19 }
 0x214   : > { %283 = vrot.lane.b32.xlu1 %v583_v2, %s546_s20 }
 0x218   : > { %281 = vrot.lane.b32.xlu1 %v472_v20, %s547_s21 }
 0x290   : > { %v225_v21 = vpop.xlane.xlu1 %224 }
 0x291   : > { %528 = vrcp.f32 %v225_v21 }
 0x294   : > { %v284_v23 = vpop.permute.xlu1 %283 }
 0x295   : > { %v289_v25 = vsel %vm169_vm1, %v284_v23, 0 }
 0x298   : > { %v282_v27 = vpop.permute.xlu1 %281 }
 0x29b   : > { %v529_v22 = vpop.eup %528 }
 0x29c   : > { %v227_v24 = vmul.f32 %v529_v22, %v527_v18 }
 0x29e   : > { %v228_v26 = vpack.c.bf16 %v227_v24, %v227_v24 }
 0x2a0   : > { %494 = vmatmul.mubr.msk.bf16.vlgmr.msra.gmra.mrb[0].mxu1 %vm216_vm2, %v228_v26 }
 0x2a1   : > { %498 = vmatpush3.bf16.xpose.msra.mxu1 %v289_v25  ;;  %499 = vmatprep.mubr.msk.bf16.mxu1 %vm543_vm0, %v542_v0 }
 0x2a8   : > { %500 = vmatmul.mubr.msk.bf16.vlgmr.msra.gmra.mrb[4].mxu1 %vm169_vm1, %v282_v27 }
 0x373   : > { %v272_v28 = vpop.f32.mrb[0].mxu1 }
 0x374   : > { %v495_v29 = vpop.f32.mrb[1].mxu1 }
 0x375   : > { %v275_v30 = vpop.f32.mrb[2].mxu1 }
 0x376   : > { %v496_v31 = vpop.f32.mrb[3].mxu1 }
 0x37b   : > { %v325_v32 = vpop.f32.mrb[4].mxu1 }
 0x37c   : > { %v326_v33 = vadd.f32 %v468_v6, %v325_v32  ;;  %v501_v34 = vpop.f32.mrb[5].mxu1 }
 0x37d   : > { %v328_v35 = vpop.f32.mrb[6].mxu1 }
 0x37e   : > { %v502_v36 = vpop.f32.mrb[7].mxu1  ;;  %v331_v37 = vsel %vm216_vm2, %v326_v33, -inf }
 0x37f   : > { %332 = vmax.xlane.f32.xlu1 %v331_v37 }
 0x40c   : > { %v333_v38 = vpop.xlane.xlu1 %332 }
 0x40d   : > { %v334_v39 = vsub.f32 %v326_v33, %v333_v38 }
 0x40f   : > { %v335_v40 = vmul.f32 1.442695, %v334_v39 }
 0x411   : > { %530 = vpow2.f32 %v335_v40 }
 0x41b   : > { %v531_v41 = vpop.eup %530 }
 0x41c   : > { %v337_v42 = vsel %vm216_vm2, %v531_v41, 0.0 }
 0x41d   : > { %338 = vadd.xlane.f32.xlu0 %v337_v42 }
 0x433   : > { %343 = vrot.lane.b32.xlu0 %v583_v2, %s548_s22 }
 0x4aa   : > { %v339_v43 = vpop.xlane.xlu0 %338 }
 0x4ab   : > { %532 = vrcp.f32 %v339_v43 }
 0x4ae   : > { %v344_v44 = vpop.permute.xlu0 %343 }
 0x4af   : > { %v349_v45 = vsel %vm234_vm3, %v344_v44, 0 }
 0x4b0   : > { %504 = vmatpush3.bf16.msra.mxu0 %v349_v45 }
 0x4b5   : > { %v533_v46 = vpop.eup %532 }
 0x4b6   : > { %v341_v47 = vmul.f32 %v533_v46, %v531_v41 }
 0x4b8   : > { %v342_v48 = vpack.c.bf16 %v341_v47, %v341_v47 }
 0x4ba   : > { %506 = vmatmul.mubr.msk.bf16.vlgmr.msra.gmra.mrb[4].mxu0 %vm216_vm2, %v342_v48 }
 0x58d   : > { %v385_v49 = vpop.f32.mrb[4].mxu0 }
 0x58e   : > { %392 = vrot.lane.b32.xlu0 %v385_v49, %s549_s23  ;;  %v507_v50 = vpop.f32.mrb[5].mxu0 }
 0x58f   : > { %v388_v51 = vpop.f32.mrb[6].mxu0 }
 0x590   : > { %v508_v52 = vpop.f32.mrb[7].mxu0 }
 0x600   : > { %v393_v53 = vpop.permute.xlu0 %392 }
 0x601   : > { %v395_v54 = vsel %vm169_vm1, %v272_v28, %v393_v53 }
 0x602   : > { %v396_v55 = vpack.c.bf16 %v395_v54, %v395_v54 }
 0x604   : > { %398 = vst.msk [vmem:[%s152_s26] sm:$0xf] %vm397_vm4, %v396_v55 }
 0x605 PF: > { %s12_s9 = sadd.s32 1, %s540_s9  }
 0x606   : > { %p9_p4 = scmp.ge.s32.totalorder %s12_s9, 4  }
 0x608   :  { %11 = sbr.rel (!%p9_p4) target bundleno = 1 (0x1), region = 61 }

// kernel: _lambda_.16
= control target key start
LH: loop header
LB: loop body
LE: loop exit
PB: predicated region body
PF: predicated region fallthrough
CT: control target
= control target key end

     0   :  { %v152_v0 = vmov 0.0   ;;  %vm153_vm0 = vmmov 0   ;;  %vm45_vm1 = vcmask 261120   ;;  %vm116_vm2 = vcmask 519168   ;;  %s192_s1 = inlined_call_operand.vmem [shape: bf16[32,64], index: 1, kind: input, shape index: {}]   ;;  %s193_s0 = inlined_call_operand.vmem [shape: bf16[16,32], index: 0, kind: input, shape index: {}]   ;;  %s194_s2 = inlined_call_operand.vmem [shape: f32[1,64], index: 2, kind: input, shape index: {}]   ;;  %s195_s3 = inlined_call_operand.vmem [shape: bf16[16,64], index: 3, kind: output, shape index: {}]  }
   0x1   :  { %135 = vmatprep.subr.bf16.mxu0 %v152_v0  ;;  %v145_v1 = vld [vmem:[%s192_s1] sm:$0xff]   ;;  %139 = vmatprep.mubr.msk.bf16.mxu0 %vm153_vm0, %v152_v0  ;;  %v146_v2 = vld [vmem:[%s192_s1 + $0x8] sm:$0xff]  }
   0x2   :  { %136 = vmatpush3.bf16.msra.mxu0 %v145_v1  ;;  %v147_v3 = vld [vmem:[%s193_s0] sm:$0xff]  }
   0x3   :  { %137 = vmatprep.subr.bf16.mxu0 %v152_v0  ;;  %v123_v4 = vld [vmem:[%s194_s2] ss:$0 sm:$0xff] }
   0x6   :  { %138 = vmatpush3.bf16.msra.mxu0 %v146_v2 }
   0x9   :  { %140 = vmatmul.mubr.msk.bf16.vlgmr.msra.gmra.mrb[0].mxu0 %vm45_vm1, %v147_v3 }
  0xdc   :  { %v83_v5 = vpop.f32.mrb[0].mxu0 }
  0xdd   :  { %v84_v6 = vadd.f32 %v123_v4, %v83_v5  ;;  %v141_v7 = vpop.f32.mrb[1].mxu0 }
  0xde   :  { %v86_v8 = vpop.f32.mrb[2].mxu0 }
  0xdf   :  { %v90_v9 = vmul.f32 %v84_v6, %v84_v6  ;;  %v87_v10 = vadd.f32 %v123_v4, %v86_v8  ;;  %v142_v11 = vpop.f32.mrb[3].mxu0 }
  0xe1   :  { %v92_v12 = vmul.f32 %v90_v9, %v84_v6  ;;  %v91_v13 = vmul.f32 %v87_v10, %v87_v10 }
  0xe3   :  { %v94_v14 = vmul.f32 0.044715, %v92_v12  ;;  %v93_v15 = vmul.f32 %v91_v13, %v87_v10 }
  0xe5   :  { %v96_v16 = vadd.f32 %v94_v14, %v84_v6  ;;  %v95_v17 = vmul.f32 0.044715, %v93_v15 }
  0xe7   :  { %v98_v18 = vmul.f32 0.7978846, %v96_v16  ;;  %v97_v19 = vadd.f32 %v95_v17, %v87_v10 }
  0xe9   :  { %148 = vtanh.f32 %v98_v18  ;;  %v99_v20 = vmul.f32 0.7978846, %v97_v19 }
  0xeb   :  { %150 = vtanh.f32 %v99_v20 }
  0xf3   :  { %v149_v21 = vpop.eup %148 }
  0xf4   :  { %v102_v22 = vadd.f32 1.0, %v149_v21 }
  0xf5   :  { %v151_v23 = vpop.eup %150 }
  0xf6   :  { %v104_v24 = vmul.f32 0.5, %v102_v22  ;;  %v103_v25 = vadd.f32 1.0, %v151_v23 }
  0xf8   :  { %v106_v26 = vmul.f32 %v104_v24, %v84_v6  ;;  %v105_v27 = vmul.f32 0.5, %v103_v25 }
  0xfa   :  { %v130_v28 = vpack.c.bf16 %v106_v26, %v106_v26  ;;  %v107_v29 = vmul.f32 %v105_v27, %v87_v10 }
  0xfc   :  { %117 = vst.msk [vmem:[%s195_s3] sm:$0xf] %vm116_vm2, %v130_v28  ;;  %v131_v30 = vpack.c.bf16 %v107_v29, %v107_v29 }
  0xfe   :  { %118 = vst.msk [vmem:[%s195_s3 + $0x4] sm:$0xf] %vm116_vm2, %v131_v30 }

// kernel: _lambda_.23
= control target key start
LH: loop header
LB: loop body
LE: loop exit
PB: predicated region body
PF: predicated region fallthrough
CT: control target
= control target key end

     0   :  { %v134_v0 = vmov 0.0   ;;  %vm135_vm0 = vmmov 0   ;;  %vm45_vm1 = vcmask 261120   ;;  %s171_s1 = inlined_call_operand.vmem [shape: bf16[32,128], index: 1, kind: input, shape index: {}]   ;;  %s172_s0 = inlined_call_operand.vmem [shape: bf16[16,32], index: 0, kind: input, shape index: {}]   ;;  %s173_s2 = inlined_call_operand.vmem [shape: f32[1,128], index: 2, kind: input, shape index: {}]   ;;  %s174_s3 = inlined_call_operand.vmem [shape: bf16[16,128], index: 3, kind: output, shape index: {}]  }
   0x1   :  { %121 = vmatprep.subr.bf16.mxu0 %v134_v0  ;;  %v131_v1 = vld [vmem:[%s171_s1] sm:$0xff]   ;;  %125 = vmatprep.mubr.msk.bf16.mxu0 %vm135_vm0, %v134_v0  ;;  %v132_v2 = vld [vmem:[%s171_s1 + $0x8] sm:$0xff]  }
   0x2   :  { %122 = vmatpush3.bf16.msra.mxu0 %v131_v1  ;;  %v133_v3 = vld [vmem:[%s172_s0] sm:$0xff]  }
   0x3   :  { %123 = vmatprep.subr.bf16.mxu0 %v134_v0  ;;  %v104_v4 = vld [vmem:[%s173_s2] ss:$0 sm:$0xff] }
   0x6   :  { %124 = vmatpush3.bf16.msra.mxu0 %v132_v2 }
   0x9   :  { %126 = vmatmul.mubr.msk.bf16.vlgmr.msra.gmra.mrb[0].mxu0 %vm45_vm1, %v133_v3 }
  0xdc   :  { %v83_v5 = vpop.f32.mrb[0].mxu0 }
  0xdd   :  { %v127_v6 = vpop.f32.mrb[1].mxu0  ;;  %v84_v8 = vadd.f32 %v104_v4, %v83_v5 }
  0xde   :  { %v86_v7 = vpop.f32.mrb[2].mxu0 }
  0xdf   :  { %v87_v9 = vadd.f32 %v104_v4, %v86_v7  ;;  %v128_v10 = vpop.f32.mrb[3].mxu0 }
  0xe1   :  { %v116_v11 = vpack.c.bf16 %v87_v9, %v84_v8 }
  0xe3   :  { %117 = vst [vmem:[%s174_s3] sm:$0xff] %v116_v11  }

// kernel: _lambda_.17
= control target key start
LH: loop header
LB: loop body
LE: loop exit
PB: predicated region body
PF: predicated region fallthrough
CT: control target
= control target key end

     0   :  { %v227_v0 = vmov 0.0   ;;  %vm228_vm0 = vmmov 0   ;;  %vm70_vm1 = vcmask 523264   ;;  %vm121_vm2 = vcmask 261120   ;;  %s301_s1 = inlined_call_operand.vmem [shape: bf16[64,32], index: 1, kind: input, shape index: {}]   ;;  %s302_s0 = inlined_call_operand.vmem [shape: bf16[16,64], index: 0, kind: input, shape index: {}]   ;;  %s303_s3 = inlined_call_operand.vmem [shape: bf16[16,32], index: 3, kind: input, shape index: {}]   ;;  %s304_s2 = inlined_call_operand.vmem [shape: f32[1,32], index: 2, kind: input, shape index: {}]   ;;  %s305_s4 = inlined_call_operand.vmem [shape: f32[1,32], index: 4, kind: input, shape index: {}]   ;;  %s306_s5 = inlined_call_operand.vmem [shape: f32[1,32], index: 5, kind: input, shape index: {}]   ;;  %s307_s6 = inlined_call_operand.vmem [shape: bf16[16,32], index: 6, kind: output, shape index: {}]  }
   0x1   :  { %204 = vmatprep.subr.bf16.mxu0 %v227_v0  ;;  %v218_v1 = vld [vmem:[%s301_s1] sm:$0xff]   ;;  %212 = vmatprep.mubr.msk.bf16.mxu0 %vm228_vm0, %v227_v0  ;;  %v219_v2 = vld [vmem:[%s301_s1 + $0x8] sm:$0xff]   ;;  %v220_v3 = vld [vmem:[%s301_s1 + $0x10] sm:$0xff]   ;;  %vm175_vm3 = vcmask 257024  }
   0x2   :  { %205 = vmatpush3.bf16.msra.mxu0 %v218_v1  ;;  %v221_v4 = vld [vmem:[%s301_s1 + $0x18] sm:$0xff]   ;;  %v222_v5 = vld [vmem:[%s302_s0] sm:$0xff]  }
   0x3   :  { %206 = vmatprep.subr.bf16.mxu0 %v227_v0  ;;  %v196_v6 = vld [vmem:[%s303_s3] sm:$0xff]  }
   0x4   :  { %v182_v7 = vld [vmem:[%s304_s2] ss:$0 sm:$0xff]  ;;  %v197_v8 = vunpack.c.l.bf16 %v196_v6  ;;  %v198_v12 = vunpack.c.h.bf16 %v196_v6 }
   0x5   :  { %v189_v37 = vld [vmem:[%s305_s4] ss:$0 sm:$0xff] }
   0x6   :  { %207 = vmatpush3.bf16.msra.mxu0 %v219_v2  ;;  %v190_v39 = vld [vmem:[%s306_s5] ss:$0 sm:$0xff] }
   0x7   :  { %208 = vmatprep.subr.bf16.mxu0 %v227_v0 }
   0xa   :  { %209 = vmatpush3.bf16.msra.mxu0 %v220_v3 }
   0xb   :  { %210 = vmatprep.subr.bf16.mxu0 %v227_v0 }
   0xe   :  { %211 = vmatpush3.bf16.msra.mxu0 %v221_v4 }
  0x11   :  { %213 = vmatmul.mubr.msk.bf16.vlgmr.msra.gmra.mrb[0].mxu0 %vm70_vm1, %v222_v5 }
  0xe4   :  { %v108_v9 = vpop.f32.mrb[0].mxu0 }
  0xe5   :  { %v109_v10 = vadd.f32 %v182_v7, %v108_v9  ;;  %v214_v11 = vpop.f32.mrb[1].mxu0 }
  0xe6   :  { %v111_v13 = vpop.f32.mrb[2].mxu0 }
  0xe7   :  { %v112_v14 = vadd.f32 %v182_v7, %v111_v13  ;;  %v215_v15 = vpop.f32.mrb[3].mxu0  ;;  %v119_v16 = vadd.f32 %v197_v8, %v109_v10 }
  0xe9   :  { %v122_v17 = vsel %vm121_vm2, %v119_v16, 0.0  ;;  %v120_v18 = vadd.f32 %v198_v12, %v112_v14 }
  0xea   :  { %123 = vadd.xlane.f32.xlu0 %v122_v17 }
  0xeb   :  { %v125_v19 = vsel %vm121_vm2, %v120_v18, 0.0 }
  0xee   :  { %126 = vadd.xlane.f32.xlu0 %v125_v19 }
 0x177   :  { %v124_v20 = vpop.xlane.xlu0 %123 }
 0x178   :  { %v129_v21 = vmul.f32 0.03125, %v124_v20 }
 0x17a   :  { %v131_v22 = vsub.f32 %v119_v16, %v129_v21 }
 0x17b   :  { %v127_v23 = vpop.xlane.xlu0 %126 }
 0x17c   :  { %v130_v24 = vmul.f32 0.03125, %v127_v23  ;;  %v133_v25 = vmul.f32 %v131_v22, %v131_v22 }
 0x17e   :  { %v132_v26 = vsub.f32 %v120_v18, %v130_v24  ;;  %v135_v27 = vsel %vm121_vm2, %v133_v25, 0.0 }
 0x17f   :  { %136 = vadd.xlane.f32.xlu1 %v135_v27 }
 0x180   :  { %v134_v28 = vmul.f32 %v132_v26, %v132_v26 }
 0x182   :  { %v138_v29 = vsel %vm121_vm2, %v134_v28, 0.0 }
 0x183   :  { %139 = vadd.xlane.f32.xlu1 %v138_v29 }
 0x20c   :  { %v137_v30 = vpop.xlane.xlu1 %136 }
 0x20d   :  { %v141_v31 = vmul.f32 0.03125, %v137_v30 }
 0x20f   :  { %v143_v32 = vadd.f32 1e-12, %v141_v31 }
 0x210   :  { %v140_v33 = vpop.xlane.xlu1 %139 }
 0x211   :  { %223 = vrsqrt.f32 %v143_v32  ;;  %v142_v34 = vmul.f32 0.03125, %v140_v33 }
 0x213   :  { %v144_v35 = vadd.f32 1e-12, %v142_v34 }
 0x215   :  { %225 = vrsqrt.f32 %v144_v35 }
 0x21b   :  { %v224_v36 = vpop.eup %223 }
 0x21c   :  { %v147_v38 = vmul.f32 %v224_v36, %v131_v22 }
 0x21e   :  { %v156_v40 = vmul.f32 %v189_v37, %v147_v38 }
 0x21f   :  { %v226_v41 = vpop.eup %225 }
 0x220   :  { %v165_v42 = vadd.f32 %v190_v39, %v156_v40  ;;  %v148_v43 = vmul.f32 %v226_v41, %v132_v26 }
 0x222   :  { %v193_v44 = vpack.c.bf16 %v165_v42, %v165_v42  ;;  %v157_v45 = vmul.f32 %v189_v37, %v148_v43 }
 0x224   :  { %176 = vst.msk [vmem:[%s307_s6] sm:$0xf] %vm175_vm3, %v193_v44  ;;  %v166_v46 = vadd.f32 %v190_v39, %v157_v45 }
 0x226   :  { %v194_v47 = vpack.c.bf16 %v166_v46, %v166_v46 }
 0x228   :  { %177 = vst.msk [vmem:[%s307_s6 + $0x4] sm:$0xf] %vm175_vm3, %v194_v47 }

</bundles_post_ra>
